<compile_context>
chip_gen: v6e
topology: v6e:2x2x1
jax: 0.10.0
libtpu: 0.0.40
codegen_flags: <defaults>
</compile_context>

<pallas_src>
import functools

import jax
import jax.numpy as jnp
from jax import lax
from jax.experimental import pallas as pl
from jax.experimental.pallas import tpu as pltpu


# ---------------------------------------------------------------------------
# Kernel A: 3x3 conv + folded BN + ReLU + 1x1 classification (one image/step).
# ---------------------------------------------------------------------------
def _conv_bn_relu_cls_kernel(x_ref, wconv_ref, bn_scale_ref, bn_shift_ref,
                             wcls_ref, bcls_ref, o_ref, *, W2, Qp, Cmid):
    # x_ref:          (Cin, Qp)     bf16, Qp = (H+2)*(W+2) flattened padded image
    # wconv_ref:      (9, Cmid, Cin) bf16, tap-major 3x3 conv weights
    # bn_scale/shift: (Cmid, 1)     f32 folded BatchNorm (eval mode)
    # wcls_ref:       (ncls, Cmid)  bf16 1x1 classification weights
    # bcls_ref:       (ncls, 1)     f32
    # o_ref:          (ncls, Qp)    f32 logits on the padded grid (valid at [:H,:W])
    x = x_ref[...]                                   # resident, reused by all taps
    acc = jnp.zeros((Cmid, Qp), jnp.float32)
    for tap in range(9):                             # static, unrolled
        dy, dx = tap // 3, tap % 3
        off = dy * W2 + dx
        y = jnp.dot(wconv_ref[tap], x, preferred_element_type=jnp.float32)
        if off:
            # acc[:, q] needs y[:, q + off]; lane rotation instead of a shifted
            # window copy of the (big) input operand.  Wrapped lanes only land
            # in the padded/garbage columns, which are cropped later.
            y = pltpu.roll(y, shift=Qp - off, axis=1)
        acc = acc + y

    # BatchNorm (eval, folded) + ReLU.  Dropout2d(p=0.1) is identity in eval.
    h = jnp.maximum(acc * bn_scale_ref[...] + bn_shift_ref[...], 0.0)

    # 1x1 classification conv (with bias) == channel matmul, bf16 in / f32 acc.
    logits = jnp.dot(wcls_ref[...], h.astype(wcls_ref.dtype),
                     preferred_element_type=jnp.float32) + bcls_ref[...]
    o_ref[...] = logits.astype(o_ref.dtype)


# ---------------------------------------------------------------------------
# Kernel B: separable bilinear (align_corners=True) upsample, lane-dense output.
# ---------------------------------------------------------------------------
def _bilinear_upsample_kernel(lt_ref, rh_ref, rwt_ref, o_ref, *, ncls):
    # lt_ref: (ncls, H, W) f32 logits; rh_ref: (Hout, H); rwt_ref: (W, Wout)
    # o_ref:  (ncls, Hout, Wout)  -> Wout on lanes (lane-dense, NCHW layout)
    rh = rh_ref[...]
    rwt = rwt_ref[...]
    for c in range(ncls):                            # static, ncls is small
        t = jnp.dot(lt_ref[c], rwt, preferred_element_type=jnp.float32)   # (H, Wout)
        o_ref[c] = jnp.dot(rh, t, preferred_element_type=jnp.float32
                           ).astype(o_ref.dtype)                           # (Hout, Wout)


# ---------------------------------------------------------------------------
# Bilinear (align_corners=True) interpolation matrix, same math as F.interpolate.
# ---------------------------------------------------------------------------
def _interp_matrix(out_size, in_size):
    idx = jnp.arange(out_size, dtype=jnp.float32)
    if out_size > 1:
        src = idx * (in_size - 1) / (out_size - 1)
    else:
        src = jnp.zeros_like(idx)
    lo = jnp.clip(jnp.floor(src), 0, in_size - 1).astype(jnp.int32)
    hi = jnp.minimum(lo + 1, in_size - 1)
    frac = src - lo.astype(jnp.float32)
    rows = jnp.arange(out_size)
    R = jnp.zeros((out_size, in_size), jnp.float32)
    R = R.at[rows, lo].add(1.0 - frac)
    R = R.at[rows, hi].add(frac)
    return R


# ---------------------------------------------------------------------------
# Wrapper: NCHW in -> NCHW out (no transposes; only pad / flatten / crop glue).
# ---------------------------------------------------------------------------
def decode_psp_feature(x_nchw, params, height, width):
    N, Cin, H, W = x_nchw.shape
    wconv = params["conv_w"]                  # (Cmid, Cin, 3, 3)  PyTorch OIHW
    Cmid = wconv.shape[0]
    wcls = params["cls_w"]                    # (ncls, Cmid, 1, 1)
    ncls = wcls.shape[0]
    eps = 1e-5
    H2, W2 = H + 2, W + 2
    Qp = H2 * W2

    # Fold BatchNorm (eval mode) into per-channel scale/shift (f32).
    inv_std = 1.0 / jnp.sqrt(params["bn_var"].astype(jnp.float32) + eps)
    bn_scale = (params["bn_gamma"] * inv_std).reshape(Cmid, 1).astype(jnp.float32)
    bn_shift = (params["bn_beta"] -
                params["bn_mean"] * params["bn_gamma"] * inv_std
                ).reshape(Cmid, 1).astype(jnp.float32)

    # Stay channels-first: zero-pad spatially, flatten (H+2)*(W+2), cast to bf16.
    x_pad = jnp.pad(x_nchw, ((0, 0), (0, 0), (1, 1), (1, 1)))
    x_flat = x_pad.reshape(N, Cin, Qp).astype(jnp.bfloat16)

    # 3x3 conv weights -> tap-major (9, Cmid, Cin); 1x1 conv -> (ncls, Cmid).
    wconv_t = jnp.transpose(wconv, (2, 3, 0, 1)).reshape(9, Cmid, Cin
                                                         ).astype(jnp.bfloat16)
    wcls_t = wcls[:, :, 0, 0].astype(jnp.bfloat16)              # (ncls, Cmid)
    bcls = params["cls_b"].reshape(ncls, 1).astype(jnp.float32)

    cparams = pltpu.CompilerParams(
        dimension_semantics=("parallel",),          # megacore-shardable on v7x
        vmem_limit_bytes=48 * 1024 * 1024)          # > v5e/v6e defaults, < v7x VMEM

    # --- Kernel A: conv3x3 + BN + ReLU + 1x1 cls on the padded flat grid.
    kernel_a = functools.partial(_conv_bn_relu_cls_kernel,
                                 W2=W2, Qp=Qp, Cmid=Cmid)
    logits_pad = pl.pallas_call(
        kernel_a,
        out_shape=jax.ShapeDtypeStruct((N, ncls, Qp), jnp.float32),
        grid_spec=pltpu.PrefetchScalarGridSpec(
            num_scalar_prefetch=0,
            grid=(N,),
            in_specs=[
                pl.BlockSpec((None, Cin, Qp), lambda n: (n, 0, 0)),
                pl.BlockSpec((9, Cmid, Cin), lambda n: (0, 0, 0)),
                pl.BlockSpec((Cmid, 1), lambda n: (0, 0)),
                pl.BlockSpec((Cmid, 1), lambda n: (0, 0)),
                pl.BlockSpec((ncls, Cmid), lambda n: (0, 0)),
                pl.BlockSpec((ncls, 1), lambda n: (0, 0)),
            ],
            out_specs=pl.BlockSpec((None, ncls, Qp), lambda n: (n, 0, 0)),
        ),
        compiler_params=cparams,
    )(x_flat, wconv_t, bn_scale, bn_shift, wcls_t, bcls)

    # Crop the 2 garbage border rows/cols (tiny tensor, plain XLA, still NCHW).
    logits = logits_pad.reshape(N, ncls, H2, W2)[:, :, :H, :W]

    # Separable bilinear resize (align_corners=True).
    rh = _interp_matrix(height, H)                   # (Hout, H)
    rwt = _interp_matrix(width, W).T                 # (W, Wout)

    kernel_b = functools.partial(_bilinear_upsample_kernel, ncls=ncls)
    out = pl.pallas_call(
        kernel_b,
        out_shape=jax.ShapeDtypeStruct((N, ncls, height, width), jnp.float32),
        grid_spec=pltpu.PrefetchScalarGridSpec(
            num_scalar_prefetch=0,
            grid=(N,),
            in_specs=[
                pl.BlockSpec((None, ncls, H, W), lambda n: (n, 0, 0, 0)),
                pl.BlockSpec((height, H), lambda n: (0, 0)),
                pl.BlockSpec((W, width), lambda n: (0, 0)),
            ],
            out_specs=pl.BlockSpec((None, ncls, height, width),
                                   lambda n: (n, 0, 0, 0)),
        ),
        compiler_params=cparams,
    )(logits, rh, rwt)

    return out                                       # already NCHW


# ---------------------------------------------------------------------------
# Pure-JAX reference (same math path as the PyTorch module, eval mode).
# Matmul inputs are bf16-quantized to match the kernel's mixed precision.
# ---------------------------------------------------------------------------
def decode_psp_feature_ref(x_nchw, params, height, width):
    eps = 1e-5
    q = lambda a: a.astype(jnp.bfloat16).astype(jnp.float32)
    conv = lax.conv_general_dilated(
        q(x_nchw), q(params["conv_w"]),
        window_strides=(1, 1), padding=((1, 1), (1, 1)),
        dimension_numbers=("NCHW", "OIHW", "NCHW"))
    g = params["bn_gamma"].reshape(1, -1, 1, 1)
    b = params["bn_beta"].reshape(1, -1, 1, 1)
    m = params["bn_mean"].reshape(1, -1, 1, 1)
    v = params["bn_var"].reshape(1, -1, 1, 1)
    y = jnp.maximum(g * (conv - m) / jnp.sqrt(v + eps) + b, 0.0)
    # Dropout2d -> identity (eval).
    logits = lax.conv_general_dilated(
        q(y), q(params["cls_w"]), window_strides=(1, 1), padding="VALID",
        dimension_numbers=("NCHW", "OIHW", "NCHW"))
    logits = logits + params["cls_b"].reshape(1, -1, 1, 1)
    Rh = _interp_matrix(height, logits.shape[2])
    Rw = _interp_matrix(width, logits.shape[3])
    return jnp.einsum("oh,pw,nchw->ncop", Rh, Rw, logits)


# ---------------------------------------------------------------------------
if __name__ == "__main__":
    # Small shapes consistent with the module's forward (channel counts scaled
    # down from 4096/512 for a quick synthetic run).
    N, Cin, H, W = 2, 64, 8, 8
    Cmid, ncls = 32, 3
    height, width = 16, 16          # DecodePSPFeature(height, width, n_classes)

    key = jax.random.PRNGKey(0)
    k = jax.random.split(key, 8)
    x = jax.random.normal(k[0], (N, Cin, H, W), jnp.float32)

    params = {
        "conv_w": 0.05 * jax.random.normal(k[1], (Cmid, Cin, 3, 3), jnp.float32),
        "bn_gamma": 1.0 + 0.1 * jax.random.normal(k[2], (Cmid,), jnp.float32),
        "bn_beta": 0.1 * jax.random.normal(k[3], (Cmid,), jnp.float32),
        "bn_mean": 0.05 * jax.random.normal(k[4], (Cmid,), jnp.float32),
        "bn_var": jax.random.uniform(k[5], (Cmid,), jnp.float32, 0.5, 1.5),
        "cls_w": 0.1 * jax.random.normal(k[6], (ncls, Cmid, 1, 1), jnp.float32),
        "cls_b": 0.1 * jax.random.normal(k[7], (ncls,), jnp.float32),
    }

    out = jax.block_until_ready(decode_psp_feature(x, params, height, width))
    ref = jax.block_until_ready(decode_psp_feature_ref(x, params, height, width))

    assert out.shape == (N, ncls, height, width), out.shape
    max_err = float(jnp.max(jnp.abs(out - ref)))
    # bf16 matmul inputs (f32 accumulation) on both sides -> loose-ish tolerance.
    assert jnp.allclose(out, ref, rtol=5e-3, atol=5e-3), max_err
    print("KERNEL_OK")
</pallas_src>

<mosaic_0001>
module attributes {stable_mosaic.version = 11 : i64} {
  func.func @_conv_bn_relu_cls_kernel(%arg0: i32, %arg1: memref<1x64x100xbf16, #tpu.memory_space<vmem>>, %arg2: memref<9x32x64xbf16, #tpu.memory_space<vmem>>, %arg3: memref<32x1xf32, #tpu.memory_space<vmem>>, %arg4: memref<32x1xf32, #tpu.memory_space<vmem>>, %arg5: memref<3x32xbf16, #tpu.memory_space<vmem>>, %arg6: memref<3x1xf32, #tpu.memory_space<vmem>>, %arg7: memref<1x3x100xf32, #tpu.memory_space<vmem>>) attributes {dimension_semantics = [#tpu.dimension_semantics<parallel>], iteration_bounds = array<i64: 2>, scalar_prefetch = 0 : i64, scratch_operands = 0 : i64, tpu.core_type = #tpu.core_type<tc>, window_params = [{transform_indices = @transform_0, window_bounds = array<i64: 1, 64, 100>}, {pipeline_mode = #tpu.pipeline_mode<synchronous>, transform_indices = @transform_1, window_bounds = array<i64: 9, 32, 64>}, {pipeline_mode = #tpu.pipeline_mode<synchronous>, transform_indices = @transform_2, window_bounds = array<i64: 32, 1>}, {pipeline_mode = #tpu.pipeline_mode<synchronous>, transform_indices = @transform_3, window_bounds = array<i64: 32, 1>}, {pipeline_mode = #tpu.pipeline_mode<synchronous>, transform_indices = @transform_4, window_bounds = array<i64: 3, 32>}, {pipeline_mode = #tpu.pipeline_mode<synchronous>, transform_indices = @transform_5, window_bounds = array<i64: 3, 1>}, {transform_indices = @transform_6, window_bounds = array<i64: 1, 3, 100>}]} {
    %c0 = arith.constant 0 : index
    %c0_0 = arith.constant 0 : index
    %c0_1 = arith.constant 0 : index
    %0 = vector.load %arg1[%c0, %c0_0, %c0_1] : memref<1x64x100xbf16, #tpu.memory_space<vmem>>, vector<1x64x100xbf16>
    %1 = vector.shape_cast %0 : vector<1x64x100xbf16> to vector<64x100xbf16>
    %cst = arith.constant 0.000000e+00 : f32
    %2 = vector.broadcast %cst : f32 to vector<32x100xf32>
    %c0_2 = arith.constant 0 : index
    %c0_3 = arith.constant 0 : index
    %c0_4 = arith.constant 0 : index
    %3 = vector.load %arg2[%c0_2, %c0_3, %c0_4] : memref<9x32x64xbf16, #tpu.memory_space<vmem>>, vector<1x32x64xbf16>
    %4 = vector.shape_cast %3 : vector<1x32x64xbf16> to vector<32x64xbf16>
    %cst_5 = arith.constant dense<0.000000e+00> : vector<32x100xf32>
    %5 = tpu.matmul %4, %1, %cst_5 {dimension_numbers = #tpu.dot_dimension_numbers<[1], [0], [0], [1], [0, 0, 1, 1], [], []>} : vector<32x64xbf16>, vector<64x100xbf16>, vector<32x100xf32> -> vector<32x100xf32>
    %6 = arith.addf %2, %5 : vector<32x100xf32>
    %c1 = arith.constant 1 : index
    %c0_6 = arith.constant 0 : index
    %c0_7 = arith.constant 0 : index
    %7 = vector.load %arg2[%c1, %c0_6, %c0_7] : memref<9x32x64xbf16, #tpu.memory_space<vmem>>, vector<1x32x64xbf16>
    %8 = vector.shape_cast %7 : vector<1x32x64xbf16> to vector<32x64xbf16>
    %cst_8 = arith.constant dense<0.000000e+00> : vector<32x100xf32>
    %9 = tpu.matmul %8, %1, %cst_8 {dimension_numbers = #tpu.dot_dimension_numbers<[1], [0], [0], [1], [0, 0, 1, 1], [], []>} : vector<32x64xbf16>, vector<64x100xbf16>, vector<32x100xf32> -> vector<32x100xf32>
    %c99_i32 = arith.constant 99 : i32
    %10 = tpu.dynamic_rotate %9 by %c99_i32 dim 1 : vector<32x100xf32>, i32 -> vector<32x100xf32>
    %11 = arith.addf %6, %10 : vector<32x100xf32>
    %c2 = arith.constant 2 : index
    %c0_9 = arith.constant 0 : index
    %c0_10 = arith.constant 0 : index
    %12 = vector.load %arg2[%c2, %c0_9, %c0_10] : memref<9x32x64xbf16, #tpu.memory_space<vmem>>, vector<1x32x64xbf16>
    %13 = vector.shape_cast %12 : vector<1x32x64xbf16> to vector<32x64xbf16>
    %cst_11 = arith.constant dense<0.000000e+00> : vector<32x100xf32>
    %14 = tpu.matmul %13, %1, %cst_11 {dimension_numbers = #tpu.dot_dimension_numbers<[1], [0], [0], [1], [0, 0, 1, 1], [], []>} : vector<32x64xbf16>, vector<64x100xbf16>, vector<32x100xf32> -> vector<32x100xf32>
    %c98_i32 = arith.constant 98 : i32
    %15 = tpu.dynamic_rotate %14 by %c98_i32 dim 1 : vector<32x100xf32>, i32 -> vector<32x100xf32>
    %16 = arith.addf %11, %15 : vector<32x100xf32>
    %c3 = arith.constant 3 : index
    %c0_12 = arith.constant 0 : index
    %c0_13 = arith.constant 0 : index
    %17 = vector.load %arg2[%c3, %c0_12, %c0_13] : memref<9x32x64xbf16, #tpu.memory_space<vmem>>, vector<1x32x64xbf16>
    %18 = vector.shape_cast %17 : vector<1x32x64xbf16> to vector<32x64xbf16>
    %cst_14 = arith.constant dense<0.000000e+00> : vector<32x100xf32>
    %19 = tpu.matmul %18, %1, %cst_14 {dimension_numbers = #tpu.dot_dimension_numbers<[1], [0], [0], [1], [0, 0, 1, 1], [], []>} : vector<32x64xbf16>, vector<64x100xbf16>, vector<32x100xf32> -> vector<32x100xf32>
    %c90_i32 = arith.constant 90 : i32
    %20 = tpu.dynamic_rotate %19 by %c90_i32 dim 1 : vector<32x100xf32>, i32 -> vector<32x100xf32>
    %21 = arith.addf %16, %20 : vector<32x100xf32>
    %c4 = arith.constant 4 : index
    %c0_15 = arith.constant 0 : index
    %c0_16 = arith.constant 0 : index
    %22 = vector.load %arg2[%c4, %c0_15, %c0_16] : memref<9x32x64xbf16, #tpu.memory_space<vmem>>, vector<1x32x64xbf16>
    %23 = vector.shape_cast %22 : vector<1x32x64xbf16> to vector<32x64xbf16>
    %cst_17 = arith.constant dense<0.000000e+00> : vector<32x100xf32>
    %24 = tpu.matmul %23, %1, %cst_17 {dimension_numbers = #tpu.dot_dimension_numbers<[1], [0], [0], [1], [0, 0, 1, 1], [], []>} : vector<32x64xbf16>, vector<64x100xbf16>, vector<32x100xf32> -> vector<32x100xf32>
    %c89_i32 = arith.constant 89 : i32
    %25 = tpu.dynamic_rotate %24 by %c89_i32 dim 1 : vector<32x100xf32>, i32 -> vector<32x100xf32>
    %26 = arith.addf %21, %25 : vector<32x100xf32>
    %c5 = arith.constant 5 : index
    %c0_18 = arith.constant 0 : index
    %c0_19 = arith.constant 0 : index
    %27 = vector.load %arg2[%c5, %c0_18, %c0_19] : memref<9x32x64xbf16, #tpu.memory_space<vmem>>, vector<1x32x64xbf16>
    %28 = vector.shape_cast %27 : vector<1x32x64xbf16> to vector<32x64xbf16>
    %cst_20 = arith.constant dense<0.000000e+00> : vector<32x100xf32>
    %29 = tpu.matmul %28, %1, %cst_20 {dimension_numbers = #tpu.dot_dimension_numbers<[1], [0], [0], [1], [0, 0, 1, 1], [], []>} : vector<32x64xbf16>, vector<64x100xbf16>, vector<32x100xf32> -> vector<32x100xf32>
    %c88_i32 = arith.constant 88 : i32
    %30 = tpu.dynamic_rotate %29 by %c88_i32 dim 1 : vector<32x100xf32>, i32 -> vector<32x100xf32>
    %31 = arith.addf %26, %30 : vector<32x100xf32>
    %c6 = arith.constant 6 : index
    %c0_21 = arith.constant 0 : index
    %c0_22 = arith.constant 0 : index
    %32 = vector.load %arg2[%c6, %c0_21, %c0_22] : memref<9x32x64xbf16, #tpu.memory_space<vmem>>, vector<1x32x64xbf16>
    %33 = vector.shape_cast %32 : vector<1x32x64xbf16> to vector<32x64xbf16>
    %cst_23 = arith.constant dense<0.000000e+00> : vector<32x100xf32>
    %34 = tpu.matmul %33, %1, %cst_23 {dimension_numbers = #tpu.dot_dimension_numbers<[1], [0], [0], [1], [0, 0, 1, 1], [], []>} : vector<32x64xbf16>, vector<64x100xbf16>, vector<32x100xf32> -> vector<32x100xf32>
    %c80_i32 = arith.constant 80 : i32
    %35 = tpu.dynamic_rotate %34 by %c80_i32 dim 1 : vector<32x100xf32>, i32 -> vector<32x100xf32>
    %36 = arith.addf %31, %35 : vector<32x100xf32>
    %c7 = arith.constant 7 : index
    %c0_24 = arith.constant 0 : index
    %c0_25 = arith.constant 0 : index
    %37 = vector.load %arg2[%c7, %c0_24, %c0_25] : memref<9x32x64xbf16, #tpu.memory_space<vmem>>, vector<1x32x64xbf16>
    %38 = vector.shape_cast %37 : vector<1x32x64xbf16> to vector<32x64xbf16>
    %cst_26 = arith.constant dense<0.000000e+00> : vector<32x100xf32>
    %39 = tpu.matmul %38, %1, %cst_26 {dimension_numbers = #tpu.dot_dimension_numbers<[1], [0], [0], [1], [0, 0, 1, 1], [], []>} : vector<32x64xbf16>, vector<64x100xbf16>, vector<32x100xf32> -> vector<32x100xf32>
    %c79_i32 = arith.constant 79 : i32
    %40 = tpu.dynamic_rotate %39 by %c79_i32 dim 1 : vector<32x100xf32>, i32 -> vector<32x100xf32>
    %41 = arith.addf %36, %40 : vector<32x100xf32>
    %c8 = arith.constant 8 : index
    %c0_27 = arith.constant 0 : index
    %c0_28 = arith.constant 0 : index
    %42 = vector.load %arg2[%c8, %c0_27, %c0_28] : memref<9x32x64xbf16, #tpu.memory_space<vmem>>, vector<1x32x64xbf16>
    %43 = vector.shape_cast %42 : vector<1x32x64xbf16> to vector<32x64xbf16>
    %cst_29 = arith.constant dense<0.000000e+00> : vector<32x100xf32>
    %44 = tpu.matmul %43, %1, %cst_29 {dimension_numbers = #tpu.dot_dimension_numbers<[1], [0], [0], [1], [0, 0, 1, 1], [], []>} : vector<32x64xbf16>, vector<64x100xbf16>, vector<32x100xf32> -> vector<32x100xf32>
    %c78_i32 = arith.constant 78 : i32
    %45 = tpu.dynamic_rotate %44 by %c78_i32 dim 1 : vector<32x100xf32>, i32 -> vector<32x100xf32>
    %46 = arith.addf %41, %45 : vector<32x100xf32>
    %c0_30 = arith.constant 0 : index
    %c0_31 = arith.constant 0 : index
    %47 = vector.load %arg3[%c0_30, %c0_31] : memref<32x1xf32, #tpu.memory_space<vmem>>, vector<32x1xf32>
    %48 = vector.broadcast %47 : vector<32x1xf32> to vector<32x100xf32>
    %49 = arith.mulf %46, %48 : vector<32x100xf32>
    %c0_32 = arith.constant 0 : index
    %c0_33 = arith.constant 0 : index
    %50 = vector.load %arg4[%c0_32, %c0_33] : memref<32x1xf32, #tpu.memory_space<vmem>>, vector<32x1xf32>
    %51 = vector.broadcast %50 : vector<32x1xf32> to vector<32x100xf32>
    %52 = arith.addf %49, %51 : vector<32x100xf32>
    %cst_34 = arith.constant 0.000000e+00 : f32
    %53 = vector.broadcast %cst_34 : f32 to vector<32x100xf32>
    %54 = arith.maximumf %52, %53 : vector<32x100xf32>
    %c0_35 = arith.constant 0 : index
    %c0_36 = arith.constant 0 : index
    %55 = vector.load %arg5[%c0_35, %c0_36] : memref<3x32xbf16, #tpu.memory_space<vmem>>, vector<3x32xbf16>
    %56 = arith.truncf %54 : vector<32x100xf32> to vector<32x100xbf16>
    %cst_37 = arith.constant dense<0.000000e+00> : vector<3x100xf32>
    %57 = tpu.matmul %55, %56, %cst_37 {dimension_numbers = #tpu.dot_dimension_numbers<[1], [0], [0], [1], [0, 0, 1, 1], [], []>} : vector<3x32xbf16>, vector<32x100xbf16>, vector<3x100xf32> -> vector<3x100xf32>
    %c0_38 = arith.constant 0 : index
    %c0_39 = arith.constant 0 : index
    %58 = vector.load %arg6[%c0_38, %c0_39] : memref<3x1xf32, #tpu.memory_space<vmem>>, vector<3x1xf32>
    %59 = vector.broadcast %58 : vector<3x1xf32> to vector<3x100xf32>
    %60 = arith.addf %57, %59 : vector<3x100xf32>
    %c0_40 = arith.constant 0 : index
    %c0_41 = arith.constant 0 : index
    %c0_42 = arith.constant 0 : index
    %61 = vector.load %arg7[%c0_40, %c0_41, %c0_42] : memref<1x3x100xf32, #tpu.memory_space<vmem>>, vector<1x3x100xf32>
    %62 = vector.shape_cast %61 : vector<1x3x100xf32> to vector<3x100xf32>
    %63 = vector.shape_cast %60 : vector<3x100xf32> to vector<1x3x100xf32>
    tpu.vector_store %arg7[%c0_40, %c0_41, %c0_42], %63 {strides = array<i32>} : memref<1x3x100xf32, #tpu.memory_space<vmem>>, vector<1x3x100xf32>,
    return
  }
  func.func @transform_0(%arg0: i32) -> (i32, i32, i32) {
    %c0_i32 = arith.constant 0 : i32
    %c0_i32_0 = arith.constant 0 : i32
    %c0_i32_1 = arith.constant 0 : i32
    return %arg0, %c0_i32, %c0_i32_0 : i32, i32, i32
  }
  func.func @transform_1(%arg0: i32) -> (i32, i32, i32) {
    %c0_i32 = arith.constant 0 : i32
    %c0_i32_0 = arith.constant 0 : i32
    %c0_i32_1 = arith.constant 0 : i32
    %c0_i32_2 = arith.constant 0 : i32
    return %c0_i32, %c0_i32_0, %c0_i32_1 : i32, i32, i32
  }
  func.func @transform_2(%arg0: i32) -> (i32, i32) {
    %c0_i32 = arith.constant 0 : i32
    %c0_i32_0 = arith.constant 0 : i32
    %c0_i32_1 = arith.constant 0 : i32
    return %c0_i32, %c0_i32_0 : i32, i32
  }
  func.func @transform_3(%arg0: i32) -> (i32, i32) {
    %c0_i32 = arith.constant 0 : i32
    %c0_i32_0 = arith.constant 0 : i32
    %c0_i32_1 = arith.constant 0 : i32
    return %c0_i32, %c0_i32_0 : i32, i32
  }
  func.func @transform_4(%arg0: i32) -> (i32, i32) {
    %c0_i32 = arith.constant 0 : i32
    %c0_i32_0 = arith.constant 0 : i32
    %c0_i32_1 = arith.constant 0 : i32
    return %c0_i32, %c0_i32_0 : i32, i32
  }
  func.func @transform_5(%arg0: i32) -> (i32, i32) {
    %c0_i32 = arith.constant 0 : i32
    %c0_i32_0 = arith.constant 0 : i32
    %c0_i32_1 = arith.constant 0 : i32
    return %c0_i32, %c0_i32_0 : i32, i32
  }
  func.func @transform_6(%arg0: i32) -> (i32, i32, i32) {
    %c0_i32 = arith.constant 0 : i32
    %c0_i32_0 = arith.constant 0 : i32
    %c0_i32_1 = arith.constant 0 : i32
    return %arg0, %c0_i32, %c0_i32_0 : i32, i32, i32
  }
}

</mosaic_0001>

<bundles_post_ra>
// kernel: tpu_custom_call.1
= control target key start
LH: loop header
LB: loop body
LE: loop exit
PB: predicated region body
PF: predicated region fallthrough
CT: control target
= control target key end

     0   :  { %11 = vsyncpa [#allocation3], 0  ;;  %s1829_s21 = smov 0   ;;  %s2331_s0 = inlined_call_operand.vmem [shape: bf16[2,64,100], index: 0, kind: input, shape index: {}]   ;;  %s2332_s1 = inlined_call_operand.hbm [shape: bf16[9,32,64], index: 1, kind: input, shape index: {}]   ;;  %s2333_s2 = inlined_call_operand.vmem [shape: f32[32,1], index: 2, kind: input, shape index: {}]   ;;  %s2334_s3 = inlined_call_operand.vmem [shape: f32[32,1], index: 3, kind: input, shape index: {}]   ;;  %s2335_s4 = inlined_call_operand.vmem [shape: bf16[3,32], index: 4, kind: input, shape index: {}]   ;;  %s2336_s5 = inlined_call_operand.vmem [shape: f32[3,1], index: 5, kind: input, shape index: {}]   ;;  %s2337_s6 = inlined_call_operand.vmem [shape: f32[2,3,100], index: 6, kind: output, shape index: {}]  }
   0x1 LB: > { %s1835_s22 = sadd.s32 4294967295, %s1777_s21   ;;  %p1459_p0 = scmp.ge.s32.totalorder %s1777_s21, 1  ;;  %s1777_s21 = sphi %s1829_s21, %s17_s21  }
   0x2   : > { %p179_p1 = scmp.lt.s32.totalorder %s1777_s21, 3  ;;  %s1779_s23 = smov [#allocation2]  }
   0x3   : > { %s191_s24 = sshll.u32 %s1779_s23, 4  ;;  %p1692_p3 = scmp.eq.s32.totalorder %s1835_s22, 0  ;;  %s192_s24 = int_to_ptr.vmem [resolvable:$true] %s191_s24 }
   0x4   : > { %p1839_p2 = pnand %p1459_p0, %p179_p1  ;;  %s1752_s26 = scalar_lea.vmem %s192_s24, 2304 }
   0x5   : > { %p1753_p7 = scmp.ne.s32.totalorder %s192_s24, %s1752_s26  ;;  %p1760_p10 = scmp.lt.s32.totalorder %s192_s24, %s192_s24 }
   0x6   : > { %p1688_p4 = pneg %p1839_p2  ;;  %p1761_p11 = scmp.lt.s32.totalorder %s1752_s26, %s1752_s26 }
   0x8   : > { %p1689_p5 = pnand %p1692_p3, %p1688_p4  ;;  %p1762_p12 = por %p1761_p11, %p1760_p10 }
   0xa   : > { %p1743_p6 = pneg %p1689_p5 }
   0xc   : > { %p1755_p8 = pnand %p1753_p7, %p1743_p6 }
   0xe   : > { %p1756_p9 = pneg %p1755_p8 }
  0x10   : > { %p1763_p13 = pnand %p1762_p12, %p1756_p9 }
  0x12   : > { %1766 = shalt.err (!%p1763_p13)
}
  0x13   : > { %s1780_s27 = smov 64   ;;  %s1781_s28 = smov 4  }
  0x14   : > { %1691 = dma.hbm_to_vmem [thread:$0]  (!%p1689_p5), %s2332_s1, 2304, %s192_s24, [#allocation3], %s1780_s27, %s1780_s27, %s1781_s28  }
  0x15   : > { %227 = sbr.rel (%p1839_p2) target bundleno = 881 (0x371), region = 44 }
  0x1a   : > { %1772 = dma.done.wait (%p1692_p3), [#allocation3], 2304  }
  0x1b   : > { %1774 = vsyncadd (%p1692_p3), [#allocation3], 4294964992  ;;  %p256_p0 = scmp.lt.s32.totalorder %s1835_s22, 1  ;;  %v1782_v0 = vmov 0   ;;  %vm317_vm0 = vcmask 523264   ;;  %v1723_v4 = vld [vmem:[#allocation2 + $0x10] sm:$0xff]  }
  0x1c   : > { %1717 = vset.pattern.permute.xlu0 %v1782_v0  ;;  %1718 = vset.pattern.permute.xlu1 %v1782_v0  ;;  %v1724_v5 = vld [vmem:[#allocation2] sm:$0xff]   ;;  %v1725_v7 = vld [vmem:[#allocation2 + $0x18] sm:$0xff]   ;;  %v1726_v8 = vld [vmem:[#allocation2 + $0x8] sm:$0xff]   ;;  %s1783_s29 = smov 100   ;;  %vm373_vm1 = vcmask 1048352   ;;  %s1784_s30 = smov 127  }
  0x1d   : > { %s2340_s22 = smov (!%p256_p0, %s1835_s22), 1  ;;  %1576 = vmatprep.mubr.msk.bf16.mxu0 %vm317_vm0, %v1723_v4  ;;  %1588 = vmatprep.mubr.msk.bf16.mxu1 %vm317_vm0, %v1724_v5  ;;  %v1727_v9 = vld [vmem:[#allocation2 + $0x20] sm:$0xff]   ;;  %v1728_v10 = vld [vmem:[#allocation2 + $0x30] sm:$0xff]   ;;  %v1280_v12 = vld [vmem:[%s2333_s2 + $0x18] sm:$0xff]  ;;  %s1786_s8 = smov 118   ;;  %vm1793_vm2 = vmmov 0  }
  0x1e   : > { %s1510_s7 = sshll.u32 %s2340_s22, 5  ;;  %v1279_v11 = vld [vmem:[%s2333_s2 + $0x10] sm:$0xff]  ;;  %1298 = vperm.xlu1 %1718, %v1280_v12   ;;  %v1308_v13 = vld [vmem:[%s2334_s3 + $0x18] sm:$0xff]  ;;  %v1729_v15 = vld [vmem:[#allocation2 + $0x28] sm:$0xff]   ;;  %s1787_s9 = smov 117   ;;  %vm1346_vm3 = vcmask 261120  }
  0x1f   : > { %s260_s10 = scalar_lea.vmem %s2331_s0, %s1510_s7  ;;  %1293 = vperm.xlu0 %1717, %v1279_v11   ;;  %v1307_v14 = vld [vmem:[%s2334_s3 + $0x10] sm:$0xff]  ;;  %v1730_v16 = vld [vmem:[#allocation2 + $0x38] sm:$0xff]   ;;  %v1278_v17 = vld [vmem:[%s2333_s2 + $0x8] sm:$0xff]  ;;  %s1785_s7 = smov 126   ;;  %vm1390_vm4 = vcmask 813056  }
  0x20   : > { %v1865_v1 = vld [vmem:[%s260_s10 + $0x18] sm:$0xff]   ;;  %v1867_v2 = vld [vmem:[%s260_s10 + $0x10] sm:$0xff]   ;;  %v1873_v3 = vld [vmem:[%s260_s10 + $0x8] sm:$0xff]   ;;  %s1789_s11 = smov 108   ;;  %s1790_s12 = smov 107  }
  0x21   : > { %1568 = vmatprep.subr.bf16.mxu0 %v1865_v1  ;;  %1580 = vmatprep.subr.bf16.mxu1 %v1865_v1  ;;  %v1882_v6 = vld [vmem:[%s260_s10] sm:$0xff]   ;;  %v1732_v20 = vld [vmem:[#allocation2 + $0x50] sm:$0xff]   ;;  %v1306_v21 = vld [vmem:[%s2334_s3 + $0x8] sm:$0xff]  ;;  %s1788_s10 = smov 116   ;;  %s1791_s13 = smov 106  }
  0x22   : > { %1569 = vmatpush3.bf16.msra.mxu0 %v1865_v1  ;;  %1581 = vmatpush3.bf16.msra.mxu1 %v1865_v1  ;;  %v1277_v18 = vld [vmem:[%s2333_s2] sm:$0xff]  ;;  %v1733_v23 = vld [vmem:[#allocation2 + $0x48] sm:$0xff]   ;;  %v1734_v24 = vld [vmem:[#allocation2 + $0x58] sm:$0xff]   ;;  %s1466_s18 = sshll.u32 %s2340_s22, 2 }
  0x23   : > { %1570 = vmatprep.subr.bf16.mxu0 %v1867_v2  ;;  %1582 = vmatprep.subr.bf16.mxu1 %v1867_v2  ;;  %v1731_v19 = vld [vmem:[#allocation2 + $0x40] sm:$0xff]   ;;  %v1737_v26 = vld [vmem:[#allocation2 + $0x70] sm:$0xff]   ;;  %v1736_v27 = vld [vmem:[#allocation2 + $0x68] sm:$0xff]   ;;  %s264_s23 = scalar_lea.vmem %s2337_s6, %s1466_s18 }
  0x24   : > { %1326 = vperm.xlu0 %1717, %v1308_v13   ;;  %1321 = vperm.xlu1 %1718, %v1307_v14   ;;  %v1305_v22 = vld [vmem:[%s2334_s3] sm:$0xff]  ;;  %v1738_v28 = vld [vmem:[#allocation2 + $0x78] sm:$0xff]   ;;  %v1740_v30 = vld [vmem:[#allocation2 + $0x88] sm:$0xff]  }
  0x25   : > { %v1735_v25 = vld [vmem:[#allocation2 + $0x60] sm:$0xff]  }
  0x26   : > { %1571 = vmatpush3.bf16.msra.mxu0 %v1867_v2  ;;  %1583 = vmatpush3.bf16.msra.mxu1 %v1867_v2  ;;  %v1739_v29 = vld [vmem:[#allocation2 + $0x80] sm:$0xff]  }
  0x27   : > { %1572 = vmatprep.subr.bf16.mxu0 %v1873_v3  ;;  %1584 = vmatprep.subr.bf16.mxu1 %v1873_v3 }
  0x28   : > { %1288 = vperm.xlu0 %1717, %v1278_v17   ;;  %1283 = vperm.xlu1 %1718, %v1277_v18  }
  0x2a   : > { %1573 = vmatpush3.bf16.msra.mxu0 %v1873_v3  ;;  %1585 = vmatpush3.bf16.msra.mxu1 %v1873_v3 }
  0x2b   : > { %1574 = vmatprep.subr.bf16.mxu0 %v1882_v6  ;;  %1586 = vmatprep.subr.bf16.mxu1 %v1882_v6 }
  0x2c   : > { %1316 = vperm.xlu0 %1717, %v1306_v21   ;;  %1311 = vperm.xlu1 %1718, %v1305_v22  }
  0x2e   : > { %1575 = vmatpush3.bf16.msra.mxu0 %v1882_v6  ;;  %1587 = vmatpush3.bf16.msra.mxu1 %v1882_v6 }
  0x2f   : > { %1592 = vmatprep.subr.bf16.mxu0 %v1865_v1  ;;  %1604 = vmatprep.subr.bf16.mxu1 %v1865_v1 }
  0x31   : > { %1577 = vmatmul.mubr.msk.bf16.vlgmr.msra.gmra.mxu0 %vm317_vm0, %v1725_v7  ;;  %1589 = vmatmul.mubr.msk.bf16.vlgmr.msra.gmra.mxu1 %vm317_vm0, %v1726_v8 }
  0x32   : > { %1593 = vmatpush3.bf16.msra.mxu0 %v1865_v1  ;;  %1605 = vmatpush3.bf16.msra.mxu1 %v1865_v1 }
  0x33   : > { %1594 = vmatprep.subr.bf16.mxu0 %v1867_v2  ;;  %1606 = vmatprep.subr.bf16.mxu1 %v1867_v2 }
  0x34   : > { %1600 = vmatprep.mubr.msk.bf16.mxu0 %vm317_vm0, %v1727_v9  ;;  %1612 = vmatprep.mubr.msk.bf16.mxu1 %vm317_vm0, %v1728_v10 }
  0x36   : > { %1595 = vmatpush3.bf16.msra.mxu0 %v1867_v2  ;;  %1607 = vmatpush3.bf16.msra.mxu1 %v1867_v2 }
  0x37   : > { %1596 = vmatprep.subr.bf16.mxu0 %v1873_v3  ;;  %1608 = vmatprep.subr.bf16.mxu1 %v1873_v3 }
  0x3a   : > { %1597 = vmatpush3.bf16.msra.mxu0 %v1873_v3  ;;  %1609 = vmatpush3.bf16.msra.mxu1 %v1873_v3 }
  0x3b   : > { %1598 = vmatprep.subr.bf16.mxu0 %v1882_v6  ;;  %1610 = vmatprep.subr.bf16.mxu1 %v1882_v6 }
  0x3e   : > { %1599 = vmatpush3.bf16.msra.mxu0 %v1882_v6  ;;  %1611 = vmatpush3.bf16.msra.mxu1 %v1882_v6 }
  0x3f   : > { %1616 = vmatprep.subr.bf16.mxu0 %v1865_v1  ;;  %1628 = vmatprep.subr.bf16.mxu1 %v1865_v1 }
  0x41   : > { %1601 = vmatmul.mubr.msk.bf16.vlgmr.msra.gmra.mxu0 %vm317_vm0, %v1729_v15  ;;  %1613 = vmatmul.mubr.msk.bf16.vlgmr.msra.gmra.mxu1 %vm317_vm0, %v1730_v16 }
  0x42   : > { %1617 = vmatpush3.bf16.msra.mxu0 %v1865_v1  ;;  %1629 = vmatpush3.bf16.msra.mxu1 %v1865_v1 }
  0x43   : > { %1618 = vmatprep.subr.bf16.mxu0 %v1867_v2  ;;  %1630 = vmatprep.subr.bf16.mxu1 %v1867_v2 }
  0x44   : > { %1624 = vmatprep.mubr.msk.bf16.mxu0 %vm317_vm0, %v1731_v19  ;;  %1636 = vmatprep.mubr.msk.bf16.mxu1 %vm317_vm0, %v1732_v20 }
  0x46   : > { %1619 = vmatpush3.bf16.msra.mxu0 %v1867_v2  ;;  %1631 = vmatpush3.bf16.msra.mxu1 %v1867_v2 }
  0x47   : > { %1620 = vmatprep.subr.bf16.mxu0 %v1873_v3  ;;  %1632 = vmatprep.subr.bf16.mxu1 %v1873_v3 }
  0x4a   : > { %1621 = vmatpush3.bf16.msra.mxu0 %v1873_v3  ;;  %1633 = vmatpush3.bf16.msra.mxu1 %v1873_v3 }
  0x4b   : > { %1622 = vmatprep.subr.bf16.mxu0 %v1882_v6  ;;  %1634 = vmatprep.subr.bf16.mxu1 %v1882_v6 }
  0x4e   : > { %1623 = vmatpush3.bf16.msra.mxu0 %v1882_v6  ;;  %1635 = vmatpush3.bf16.msra.mxu1 %v1882_v6 }
  0x4f   : > { %1640 = vmatprep.subr.bf16.mxu0 %v1865_v1  ;;  %1652 = vmatprep.subr.bf16.mxu1 %v1865_v1 }
  0x51   : > { %1625 = vmatmul.mubr.msk.bf16.vlgmr.msra.gmra.mxu0 %vm317_vm0, %v1733_v23  ;;  %1637 = vmatmul.mubr.msk.bf16.vlgmr.msra.gmra.mxu1 %vm317_vm0, %v1734_v24 }
  0x52   : > { %1641 = vmatpush3.bf16.msra.mxu0 %v1865_v1  ;;  %1653 = vmatpush3.bf16.msra.mxu1 %v1865_v1 }
  0x53   : > { %1642 = vmatprep.subr.bf16.mxu0 %v1867_v2  ;;  %1654 = vmatprep.subr.bf16.mxu1 %v1867_v2 }
  0x54   : > { %1648 = vmatprep.mubr.msk.bf16.mxu0 %vm317_vm0, %v1735_v25  ;;  %1660 = vmatprep.mubr.msk.bf16.mxu1 %vm317_vm0, %v1737_v26 }
  0x56   : > { %1643 = vmatpush3.bf16.msra.mxu0 %v1867_v2  ;;  %1655 = vmatpush3.bf16.msra.mxu1 %v1867_v2 }
  0x57   : > { %1644 = vmatprep.subr.bf16.mxu0 %v1873_v3  ;;  %1656 = vmatprep.subr.bf16.mxu1 %v1873_v3 }
  0x5a   : > { %1645 = vmatpush3.bf16.msra.mxu0 %v1873_v3  ;;  %1657 = vmatpush3.bf16.msra.mxu1 %v1873_v3 }
  0x5b   : > { %1646 = vmatprep.subr.bf16.mxu0 %v1882_v6  ;;  %1658 = vmatprep.subr.bf16.mxu1 %v1882_v6 }
  0x5e   : > { %1647 = vmatpush3.bf16.msra.mxu0 %v1882_v6  ;;  %1659 = vmatpush3.bf16.msra.mxu1 %v1882_v6 }
  0x5f   : > { %1664 = vmatprep.subr.bf16.mxu0 %v1865_v1 }
  0x61   : > { %1649 = vmatmul.mubr.msk.bf16.vlgmr.msra.gmra.mxu0 %vm317_vm0, %v1736_v27  ;;  %1661 = vmatmul.mubr.msk.bf16.vlgmr.msra.gmra.mxu1 %vm317_vm0, %v1738_v28 }
  0x62   : > { %1665 = vmatpush3.bf16.msra.mxu0 %v1865_v1  ;;  %1672 = vmatprep.mubr.msk.bf16.mxu0 %vm317_vm0, %v1739_v29 }
  0x63   : > { %1666 = vmatprep.subr.bf16.mxu0 %v1867_v2 }
  0x66   : > { %1667 = vmatpush3.bf16.msra.mxu0 %v1867_v2 }
  0x67   : > { %1668 = vmatprep.subr.bf16.mxu0 %v1873_v3 }
  0x6a   : > { %1669 = vmatpush3.bf16.msra.mxu0 %v1873_v3 }
  0x6b   : > { %1670 = vmatprep.subr.bf16.mxu0 %v1882_v6 }
  0x6e   : > { %1671 = vmatpush3.bf16.msra.mxu0 %v1882_v6 }
  0x71   : > { %1673 = vmatmul.mubr.msk.bf16.vlgmr.msra.gmra.mxu0 %vm317_vm0, %v1740_v30 }
  0x99   : > { %v2127_v5 = vpop.permute.xlu1 %1298 }
  0x9a   : > { %v2123_v3 = vpop.permute.xlu0 %1293 }
  0x9f   : > { %v2125_v4 = vpop.permute.xlu0 %1326  ;;  %v2131_v7 = vpop.permute.xlu1 %1321 }
  0xa3   : > { %v2129_v6 = vpop.permute.xlu0 %1288  ;;  %v2135_v9 = vpop.permute.xlu1 %1283 }
  0xa7   : > { %v2133_v8 = vpop.permute.xlu0 %1316  ;;  %v2142_v14 = vpop.permute.xlu1 %1311 }
  0xf1   : > { %v1987_v31 = vpop.f32.mrf.mxu0  ;;  %v1991_v32 = vpop.f32.mrf.mxu1 }
  0xf2   : > { %380 = vrot.lane.b32.xlu0 %v1987_v31, %s1783_s29 }
  0xf3   : > { %v1993_v33 = vpop.f32.mrf.mxu0  ;;  %v1999_v35 = vpop.f32.mrf.mxu1 }
  0xf5   : > { %v1995_v34 = vpop.f32.mrf.mxu0  ;;  %v2007_v37 = vpop.f32.mrf.mxu1 }
  0xf6   : > { %374 = vrot.lane.b32.xlu0 %v1993_v33, %s1783_s29 }
  0xf7   : > { %v2001_v36 = vpop.f32.mrf.mxu0  ;;  %v2009_v38 = vpop.f32.mrf.mxu1 }
  0xf8   : > { %377 = vrot.lane.b32.xlu1 %v2001_v36, %s1783_s29 }
  0xfa   : > { %383 = vrot.lane.b32.xlu0 %v1995_v34, %s1783_s29 }
 0x101   : > { %v2011_v39 = vpop.f32.mrf.mxu0  ;;  %v2013_v40 = vpop.f32.mrf.mxu1 }
 0x102   : > { %669 = vrot.lane.b32.xlu0 %v2013_v40, %s1783_s29  ;;  %555 = vrot.lane.b32.xlu1 %v2011_v39, %s1783_s29 }
 0x103   : > { %v2019_v41 = vpop.f32.mrf.mxu0  ;;  %v2021_v42 = vpop.f32.mrf.mxu1 }
 0x105   : > { %v2023_v43 = vpop.f32.mrf.mxu0  ;;  %v2029_v44 = vpop.f32.mrf.mxu1 }
 0x106   : > { %549 = vrot.lane.b32.xlu0 %v2019_v41, %s1783_s29  ;;  %558 = vrot.lane.b32.xlu1 %v2023_v43, %s1783_s29 }
 0x107   : > { %v2035_v45 = vpop.f32.mrf.mxu0  ;;  %v2039_v46 = vpop.f32.mrf.mxu1 }
 0x10a   : > { %663 = vrot.lane.b32.xlu0 %v2021_v42, %s1783_s29  ;;  %672 = vrot.lane.b32.xlu1 %v2029_v44, %s1783_s29 }
 0x10e   : > { %552 = vrot.lane.b32.xlu1 %v2035_v45, %s1783_s29 }
 0x111   : > { %v2041_v47 = vpop.f32.mrf.mxu0  ;;  %v2043_v48 = vpop.f32.mrf.mxu1 }
 0x112   : > { %666 = vrot.lane.b32.xlu1 %v2039_v46, %s1783_s29  ;;  %783 = vrot.lane.b32.xlu0 %v2041_v47, %s1783_s29 }
 0x113   : > { %v2049_v49 = vpop.f32.mrf.mxu0  ;;  %v2051_v50 = vpop.f32.mrf.mxu1 }
 0x115   : > { %v2053_v51 = vpop.f32.mrf.mxu0  ;;  %v2059_v52 = vpop.f32.mrf.mxu1 }
 0x116   : > { %897 = vrot.lane.b32.xlu0 %v2043_v48, %s1783_s29  ;;  %786 = vrot.lane.b32.xlu1 %v2053_v51, %s1783_s29 }
 0x117   : > { %v2065_v53 = vpop.f32.mrf.mxu0  ;;  %v2071_v54 = vpop.f32.mrf.mxu1 }
 0x11a   : > { %777 = vrot.lane.b32.xlu0 %v2049_v49, %s1783_s29  ;;  %900 = vrot.lane.b32.xlu1 %v2059_v52, %s1783_s29 }
 0x11e   : > { %891 = vrot.lane.b32.xlu0 %v2051_v50, %s1783_s29  ;;  %780 = vrot.lane.b32.xlu1 %v2065_v53, %s1783_s29 }
 0x121   : > { %v2073_v55 = vpop.f32.mrf.mxu0  ;;  %v2075_v56 = vpop.f32.mrf.mxu1 }
 0x122   : > { %894 = vrot.lane.b32.xlu1 %v2071_v54, %s1783_s29  ;;  %1011 = vrot.lane.b32.xlu0 %v2073_v55, %s1783_s29 }
 0x123   : > { %v2081_v57 = vpop.f32.mrf.mxu0  ;;  %v2083_v58 = vpop.f32.mrf.mxu1 }
 0x125   : > { %v2085_v59 = vpop.f32.mrf.mxu0  ;;  %v2091_v60 = vpop.f32.mrf.mxu1 }
 0x126   : > { %1125 = vrot.lane.b32.xlu0 %v2075_v56, %s1783_s29  ;;  %1014 = vrot.lane.b32.xlu1 %v2085_v59, %s1783_s29 }
 0x127   : > { %v2097_v61 = vpop.f32.mrf.mxu0  ;;  %v2103_v62 = vpop.f32.mrf.mxu1 }
 0x12a   : > { %1005 = vrot.lane.b32.xlu0 %v2081_v57, %s1783_s29  ;;  %1128 = vrot.lane.b32.xlu1 %v2091_v60, %s1783_s29 }
 0x12e   : > { %1119 = vrot.lane.b32.xlu0 %v2083_v58, %s1783_s29  ;;  %1008 = vrot.lane.b32.xlu1 %v2097_v61, %s1783_s29 }
 0x131   : > { %v2105_v63 = vpop.f32.mrf.mxu0 }
 0x132   : > { %1122 = vrot.lane.b32.xlu1 %v2103_v62, %s1783_s29  ;;  %1239 = vrot.lane.b32.xlu0 %v2105_v63, %s1783_s29 }
 0x133   : > { %v2111_v0 = vpop.f32.mrf.mxu0 }
 0x135   : > { %v2113_v1 = vpop.f32.mrf.mxu0 }
 0x136   : > { %1233 = vrot.lane.b32.xlu0 %v2111_v0, %s1783_s29  ;;  %1242 = vrot.lane.b32.xlu1 %v2113_v1, %s1783_s29 }
 0x137   : > { %v2119_v2 = vpop.f32.mrf.mxu0 }
 0x13a   : > { %1236 = vrot.lane.b32.xlu1 %v2119_v2, %s1783_s29 }
 0x164   : > { %v381_v10 = vpop.permute.xlu0 %380 }
 0x165   : > { %v382_v11 = vsel %vm373_vm1, %v381_v10, %v1987_v31 }
 0x166   : > { %390 = vrot.lane.b32.xlu0 %v382_v11, %s1783_s29 }
 0x168   : > { %v375_v12 = vpop.permute.xlu0 %374 }
 0x169   : > { %v376_v13 = vsel %vm373_vm1, %v375_v12, %v1993_v33 }
 0x16a   : > { %386 = vrot.lane.b32.xlu0 %v376_v13, %s1783_s29  ;;  %v378_v17 = vpop.permute.xlu1 %377 }
 0x16b   : > { %v379_v18 = vsel %vm373_vm1, %v378_v17, %v2001_v36 }
 0x16c   : > { %v384_v15 = vpop.permute.xlu0 %383 }
 0x16d   : > { %v385_v16 = vsel %vm373_vm1, %v384_v15, %v1995_v34 }
 0x16e   : > { %392 = vrot.lane.b32.xlu1 %v385_v16, %s1783_s29 }
 0x172   : > { %388 = vrot.lane.b32.xlu1 %v379_v18, %s1783_s29 }
 0x174   : > { %v670_v19 = vpop.permute.xlu0 %669  ;;  %v556_v20 = vpop.permute.xlu1 %555 }
 0x175   : > { %v557_v21 = vsel %vm373_vm1, %v556_v20, %v2011_v39  ;;  %v671_v24 = vsel %vm373_vm1, %v670_v19, %v2013_v40 }
 0x176   : > { %565 = vrot.lane.b32.xlu0 %v557_v21, %s1783_s29 }
 0x178   : > { %v550_v22 = vpop.permute.xlu0 %549  ;;  %v559_v23 = vpop.permute.xlu1 %558 }
 0x179   : > { %v560_v25 = vsel %vm373_vm1, %v559_v23, %v2023_v43  ;;  %v551_v27 = vsel %vm373_vm1, %v550_v22, %v2019_v41 }
 0x17a   : > { %679 = vrot.lane.b32.xlu0 %v671_v24, %s1783_s29  ;;  %567 = vrot.lane.b32.xlu1 %v560_v25, %s1783_s29 }
 0x17c   : > { %v673_v26 = vpop.permute.xlu1 %672  ;;  %v664_v29 = vpop.permute.xlu0 %663 }
 0x17d   : > { %v674_v28 = vsel %vm373_vm1, %v673_v26, %v2029_v44  ;;  %v665_v10 = vsel %vm373_vm1, %v664_v29, %v2021_v42 }
 0x17e   : > { %561 = vrot.lane.b32.xlu0 %v551_v27, %s1783_s29  ;;  %681 = vrot.lane.b32.xlu1 %v674_v28, %s1783_s29 }
 0x180   : > { %v553_v30 = vpop.permute.xlu1 %552 }
 0x181   : > { %v554_v11 = vsel %vm373_vm1, %v553_v30, %v2035_v45 }
 0x182   : > { %675 = vrot.lane.b32.xlu0 %v665_v10, %s1783_s29  ;;  %563 = vrot.lane.b32.xlu1 %v554_v11, %s1783_s29 }
 0x184   : > { %v667_v12 = vpop.permute.xlu1 %666  ;;  %v784_v13 = vpop.permute.xlu0 %783 }
 0x185   : > { %v785_v15 = vsel %vm373_vm1, %v784_v13, %v2041_v47  ;;  %v668_v16 = vsel %vm373_vm1, %v667_v12, %v2039_v46 }
 0x186   : > { %793 = vrot.lane.b32.xlu0 %v785_v15, %s1783_s29  ;;  %677 = vrot.lane.b32.xlu1 %v668_v16, %s1783_s29 }
 0x188   : > { %v898_v17 = vpop.permute.xlu0 %897  ;;  %v787_v18 = vpop.permute.xlu1 %786 }
 0x189   : > { %v899_v19 = vsel %vm373_vm1, %v898_v17, %v2043_v48  ;;  %v788_v20 = vsel %vm373_vm1, %v787_v18, %v2053_v51 }
 0x18a   : > { %907 = vrot.lane.b32.xlu0 %v899_v19, %s1783_s29  ;;  %795 = vrot.lane.b32.xlu1 %v788_v20, %s1783_s29 }
 0x18c   : > { %v778_v21 = vpop.permute.xlu0 %777  ;;  %v901_v22 = vpop.permute.xlu1 %900 }
 0x18d   : > { %v779_v23 = vsel %vm373_vm1, %v778_v21, %v2049_v49  ;;  %v902_v24 = vsel %vm373_vm1, %v901_v22, %v2059_v52 }
 0x18e   : > { %789 = vrot.lane.b32.xlu0 %v779_v23, %s1783_s29  ;;  %909 = vrot.lane.b32.xlu1 %v902_v24, %s1783_s29 }
 0x190   : > { %v892_v25 = vpop.permute.xlu0 %891  ;;  %v781_v26 = vpop.permute.xlu1 %780 }
 0x191   : > { %v893_v27 = vsel %vm373_vm1, %v892_v25, %v2051_v50  ;;  %v782_v28 = vsel %vm373_vm1, %v781_v26, %v2065_v53 }
 0x192   : > { %903 = vrot.lane.b32.xlu0 %v893_v27, %s1783_s29  ;;  %791 = vrot.lane.b32.xlu1 %v782_v28, %s1783_s29 }
 0x194   : > { %v895_v29 = vpop.permute.xlu1 %894  ;;  %v1012_v30 = vpop.permute.xlu0 %1011 }
 0x195   : > { %v1013_v10 = vsel %vm373_vm1, %v1012_v30, %v2073_v55  ;;  %v896_v11 = vsel %vm373_vm1, %v895_v29, %v2071_v54 }
 0x196   : > { %1021 = vrot.lane.b32.xlu0 %v1013_v10, %s1783_s29  ;;  %905 = vrot.lane.b32.xlu1 %v896_v11, %s1783_s29 }
 0x198   : > { %v1126_v12 = vpop.permute.xlu0 %1125  ;;  %v1015_v13 = vpop.permute.xlu1 %1014 }
 0x199   : > { %v1127_v15 = vsel %vm373_vm1, %v1126_v12, %v2075_v56  ;;  %v1016_v16 = vsel %vm373_vm1, %v1015_v13, %v2085_v59 }
 0x19a   : > { %1135 = vrot.lane.b32.xlu0 %v1127_v15, %s1783_s29  ;;  %1023 = vrot.lane.b32.xlu1 %v1016_v16, %s1783_s29 }
 0x19c   : > { %v1006_v17 = vpop.permute.xlu0 %1005  ;;  %v1129_v18 = vpop.permute.xlu1 %1128 }
 0x19d   : > { %v1007_v19 = vsel %vm373_vm1, %v1006_v17, %v2081_v57  ;;  %v1130_v20 = vsel %vm373_vm1, %v1129_v18, %v2091_v60 }
 0x19e   : > { %1017 = vrot.lane.b32.xlu0 %v1007_v19, %s1783_s29  ;;  %1137 = vrot.lane.b32.xlu1 %v1130_v20, %s1783_s29 }
 0x1a0   : > { %v1120_v21 = vpop.permute.xlu0 %1119  ;;  %v1009_v22 = vpop.permute.xlu1 %1008 }
 0x1a1   : > { %v1121_v23 = vsel %vm373_vm1, %v1120_v21, %v2083_v58  ;;  %v1010_v24 = vsel %vm373_vm1, %v1009_v22, %v2097_v61 }
 0x1a2   : > { %1131 = vrot.lane.b32.xlu0 %v1121_v23, %s1783_s29  ;;  %1019 = vrot.lane.b32.xlu1 %v1010_v24, %s1783_s29 }
 0x1a4   : > { %v1123_v25 = vpop.permute.xlu1 %1122  ;;  %v1240_v26 = vpop.permute.xlu0 %1239 }
 0x1a5   : > { %v1241_v27 = vsel %vm373_vm1, %v1240_v26, %v2105_v63  ;;  %v1124_v28 = vsel %vm373_vm1, %v1123_v25, %v2103_v62 }
 0x1a6   : > { %1249 = vrot.lane.b32.xlu0 %v1241_v27, %s1783_s29  ;;  %1133 = vrot.lane.b32.xlu1 %v1124_v28, %s1783_s29 }
 0x1a8   : > { %v1234_v29 = vpop.permute.xlu0 %1233  ;;  %v1243_v30 = vpop.permute.xlu1 %1242 }
 0x1a9   : > { %v1235_v10 = vsel %vm373_vm1, %v1234_v29, %v2111_v0  ;;  %v1244_v11 = vsel %vm373_vm1, %v1243_v30, %v2113_v1 }
 0x1aa   : > { %1245 = vrot.lane.b32.xlu0 %v1235_v10, %s1783_s29  ;;  %1251 = vrot.lane.b32.xlu1 %v1244_v11, %s1783_s29 }
 0x1ac   : > { %v1237_v12 = vpop.permute.xlu1 %1236 }
 0x1ad   : > { %v1238_v13 = vsel %vm373_vm1, %v1237_v12, %v2119_v2 }
 0x1ae   : > { %1247 = vrot.lane.b32.xlu1 %v1238_v13, %s1783_s29 }
 0x1d8   : > { %v391_v15 = vpop.permute.xlu0 %390 }
 0x1d9   : > { %v396_v16 = vsel %vm373_vm1, %v391_v15, %v1987_v31 }
 0x1da   : > { %416 = vrot.lane.b32.xlu0 %v396_v16, %s1784_s30 }
 0x1dc   : > { %v387_v17 = vpop.permute.xlu0 %386 }
 0x1dd   : > { %v394_v18 = vsel %vm373_vm1, %v387_v17, %v1993_v33 }
 0x1de   : > { %412 = vrot.lane.b32.xlu0 %v394_v18, %s1784_s30 }
 0x1e0   : > { %v393_v19 = vpop.permute.xlu1 %392 }
 0x1e1   : > { %v397_v20 = vsel %vm373_vm1, %v393_v19, %v1995_v34 }
 0x1e2   : > { %418 = vrot.lane.b32.xlu1 %v397_v20, %s1784_s30 }
 0x1e4   : > { %v389_v21 = vpop.permute.xlu1 %388 }
 0x1e5   : > { %v395_v22 = vsel %vm373_vm1, %v389_v21, %v2001_v36 }
 0x1e6   : > { %414 = vrot.lane.b32.xlu1 %v395_v22, %s1784_s30 }
 0x1e8   : > { %v566_v23 = vpop.permute.xlu0 %565 }
 0x1e9   : > { %v571_v31 = vsel %vm373_vm1, %v566_v23, %v2011_v39 }
 0x1ea   : > { %581 = vrot.lane.b32.xlu0 %v571_v31, %s1785_s7 }
 0x1ec   : > { %v680_v24 = vpop.permute.xlu0 %679  ;;  %v568_v25 = vpop.permute.xlu1 %567 }
 0x1ed   : > { %v685_v33 = vsel %vm373_vm1, %v680_v24, %v2013_v40  ;;  %v572_v34 = vsel %vm373_vm1, %v568_v25, %v2023_v43 }
 0x1ee   : > { %695 = vrot.lane.b32.xlu0 %v685_v33, %s1786_s8  ;;  %583 = vrot.lane.b32.xlu1 %v572_v34, %s1785_s7 }
 0x1f0   : > { %v562_v26 = vpop.permute.xlu0 %561  ;;  %v682_v36 = vpop.permute.xlu1 %681 }
 0x1f1   : > { %v569_v27 = vsel %vm373_vm1, %v562_v26, %v2019_v41  ;;  %v686_v39 = vsel %vm373_vm1, %v682_v36, %v2029_v44  ;;  %v1792_v36 = vmov 0.0  }
 0x1f2   : > { %577 = vrot.lane.b32.xlu0 %v569_v27, %s1785_s7  ;;  %697 = vrot.lane.b32.xlu1 %v686_v39, %s1786_s8 }
 0x1f3   : > { %1676 = vmatprep.subr.bf16.mxu1 %v1792_v36  ;;  %1680 = vmatprep.mubr.msk.bf16.mxu1 %vm1793_vm2, %v1792_v36 }
 0x1f4   : > { %v676_v28 = vpop.permute.xlu0 %675  ;;  %v564_v29 = vpop.permute.xlu1 %563 }
 0x1f5   : > { %v683_v40 = vsel %vm373_vm1, %v676_v28, %v2021_v42  ;;  %v570_v43 = vsel %vm373_vm1, %v564_v29, %v2035_v45 }
 0x1f6   : > { %691 = vrot.lane.b32.xlu0 %v683_v40, %s1786_s8  ;;  %579 = vrot.lane.b32.xlu1 %v570_v43, %s1785_s7 }
 0x1f8   : > { %v794_v30 = vpop.permute.xlu0 %793  ;;  %v678_v10 = vpop.permute.xlu1 %677 }
 0x1f9   : > { %v799_v41 = vsel %vm373_vm1, %v794_v30, %v2041_v47  ;;  %v684_v44 = vsel %vm373_vm1, %v678_v10, %v2039_v46 }
 0x1fa   : > { %809 = vrot.lane.b32.xlu0 %v799_v41, %s1787_s9  ;;  %693 = vrot.lane.b32.xlu1 %v684_v44, %s1786_s8 }
 0x1fc   : > { %v908_v11 = vpop.permute.xlu0 %907  ;;  %v796_v12 = vpop.permute.xlu1 %795 }
 0x1fd   : > { %v913_v42 = vsel %vm373_vm1, %v908_v11, %v2043_v48  ;;  %v800_v48 = vsel %vm373_vm1, %v796_v12, %v2053_v51 }
 0x1fe   : > { %923 = vrot.lane.b32.xlu0 %v913_v42, %s1788_s10 }
 0x200   : > { %v790_v45 = vpop.permute.xlu0 %789  ;;  %v910_v13 = vpop.permute.xlu1 %909 }
 0x201   : > { %v797_v15 = vsel %vm373_vm1, %v790_v45, %v2049_v49  ;;  %v914_v20 = vsel %vm373_vm1, %v910_v13, %v2059_v52 }
 0x202   : > { %805 = vrot.lane.b32.xlu0 %v797_v15, %s1787_s9 }
 0x204   : > { %v904_v47 = vpop.permute.xlu0 %903  ;;  %v792_v46 = vpop.permute.xlu1 %791 }
 0x205   : > { %v911_v16 = vsel %vm373_vm1, %v904_v47, %v2051_v50  ;;  %v798_v51 = vsel %vm373_vm1, %v792_v46, %v2065_v53 }
 0x206   : > { %919 = vrot.lane.b32.xlu1 %v911_v16, %s1788_s10 }
 0x208   : > { %v1022_v17 = vpop.permute.xlu0 %1021  ;;  %v906_v18 = vpop.permute.xlu1 %905 }
 0x209   : > { %v912_v19 = vsel %vm373_vm1, %v906_v18, %v2071_v54  ;;  %v1027_v21 = vsel %vm373_vm1, %v1022_v17, %v2073_v55 }
 0x20a   : > { %811 = vrot.lane.b32.xlu1 %v800_v48, %s1787_s9  ;;  %921 = vrot.lane.b32.xlu0 %v912_v19, %s1788_s10 }
 0x20c   : > { %v1024_v49 = vpop.permute.xlu1 %1023  ;;  %v1136_v50 = vpop.permute.xlu0 %1135 }
 0x20d   : > { %v1141_v55 = vsel %vm373_vm1, %v1136_v50, %v2075_v56 }
 0x20e   : > { %925 = vrot.lane.b32.xlu1 %v914_v20, %s1788_s10  ;;  %1037 = vrot.lane.b32.xlu0 %v1027_v21, %s1789_s11 }
 0x210   : > { %v1138_v22 = vpop.permute.xlu1 %1137  ;;  %v1018_v23 = vpop.permute.xlu0 %1017 }
 0x211   : > { %v1142_v54 = vsel %vm373_vm1, %v1138_v22, %v2091_v60  ;;  %v1025_v60 = vsel %vm373_vm1, %v1018_v23, %v2081_v57 }
 0x212   : > { %807 = vrot.lane.b32.xlu1 %v798_v51, %s1787_s9  ;;  %1153 = vrot.lane.b32.xlu0 %v1142_v54, %s1790_s12 }
 0x214   : > { %v1020_v52 = vpop.permute.xlu1 %1019  ;;  %v1132_v25 = vpop.permute.xlu0 %1131 }
 0x215   : > { %v1026_v31 = vsel %vm373_vm1, %v1020_v52, %v2097_v61  ;;  %v1139_v56 = vsel %vm373_vm1, %v1132_v25, %v2083_v58 }
 0x216   : > { %1151 = vrot.lane.b32.xlu1 %v1141_v55, %s1790_s12  ;;  %1035 = vrot.lane.b32.xlu0 %v1026_v31, %s1789_s11 }
 0x218   : > { %v1134_v24 = vpop.permute.xlu1 %1133  ;;  %v1250_v61 = vpop.permute.xlu0 %1249 }
 0x219   : > { %v1140_v53 = vsel %vm373_vm1, %v1134_v24, %v2103_v62  ;;  %v1028_v62 = vsel %vm373_vm1, %v1024_v49, %v2085_v59  ;;  %v1340_v59 = vld [vmem:[%s2336_s5] sm:$0x7] }
 0x21a   : > { %1033 = vrot.lane.b32.xlu1 %v1025_v60, %s1789_s11  ;;  %1149 = vrot.lane.b32.xlu0 %v1140_v53, %s1790_s12 }
 0x21c   : > { %v1252_v33 = vpop.permute.xlu1 %1251  ;;  %v1246_v58 = vpop.permute.xlu0 %1245 }
 0x21d   : > { %v1256_v34 = vsel %vm373_vm1, %v1252_v33, %v2113_v1  ;;  %v1255_v1 = vsel %vm373_vm1, %v1250_v61, %v2105_v63  ;;  %v1253_v27 = vsel %vm373_vm1, %v1246_v58, %v2111_v0 }
 0x21e   : > { %1147 = vrot.lane.b32.xlu1 %v1139_v56, %s1790_s12  ;;  %1267 = vrot.lane.b32.xlu0 %v1256_v34, %s1791_s13 }
 0x220   : > { %v1248_v26 = vpop.permute.xlu1 %1247 }
 0x221   : > { %v1254_v57 = vsel %vm373_vm1, %v1248_v26, %v2119_v2 }
 0x222   : > { %1039 = vrot.lane.b32.xlu1 %v1028_v62, %s1789_s11  ;;  %1263 = vrot.lane.b32.xlu0 %v1254_v57, %s1791_s13 }
 0x226   : > { %1265 = vrot.lane.b32.xlu1 %v1255_v1, %s1791_s13 }
 0x22a   : > { %1261 = vrot.lane.b32.xlu1 %v1253_v27, %s1791_s13 }
 0x22e   : > { %1343 = vperm.xlu1 %1718, %v1340_v59  }
 0x24c   : > { %v417_v2 = vpop.permute.xlu0 %416 }
 0x24d   : > { %v473_v21 = vadd.f32 %v1991_v32, %v417_v2 }
 0x250   : > { %v413_v39 = vpop.permute.xlu0 %412 }
 0x251   : > { %v465_v55 = vadd.f32 %v1999_v35, %v413_v39 }
 0x254   : > { %v419_v28 = vpop.permute.xlu1 %418 }
 0x255   : > { %v476_v50 = vadd.f32 %v2007_v37, %v419_v28 }
 0x258   : > { %v415_v40 = vpop.permute.xlu1 %414 }
 0x259   : > { %v468_v18 = vadd.f32 %v2009_v38, %v415_v40 }
 0x25c   : > { %v582_v29 = vpop.permute.xlu0 %581 }
 0x25d   : > { %v591_v23 = vadd.f32 %v582_v29, %v473_v21 }
 0x260   : > { %v696_v63 = vpop.permute.xlu0 %695  ;;  %v584_v43 = vpop.permute.xlu1 %583 }
 0x261   : > { %v592_v52 = vadd.f32 %v584_v43, %v476_v50  ;;  %v705_v31 = vadd.f32 %v696_v63, %v591_v23 }
 0x264   : > { %v578_v30 = vpop.permute.xlu0 %577  ;;  %v698_v10 = vpop.permute.xlu1 %697 }
 0x265   : > { %v706_v24 = vadd.f32 %v698_v10, %v592_v52  ;;  %v589_v25 = vadd.f32 %v578_v30, %v465_v55 }
 0x268   : > { %v692_v41 = vpop.permute.xlu0 %691  ;;  %v580_v11 = vpop.permute.xlu1 %579 }
 0x269   : > { %v590_v48 = vadd.f32 %v580_v11, %v468_v18  ;;  %v703_v56 = vadd.f32 %v692_v41, %v589_v25 }
 0x26c   : > { %v810_v44 = vpop.permute.xlu0 %809  ;;  %v694_v0 = vpop.permute.xlu1 %693 }
 0x26d   : > { %v704_v20 = vadd.f32 %v694_v0, %v590_v48  ;;  %v819_v33 = vadd.f32 %v810_v44, %v705_v31 }
 0x270   : > { %v924_v12 = vpop.permute.xlu0 %923 }
 0x271   : > { %v933_v61 = vadd.f32 %v924_v12, %v819_v33 }
 0x274   : > { %v806_v42 = vpop.permute.xlu0 %805 }
 0x275   : > { %v817_v57 = vadd.f32 %v806_v42, %v703_v56 }
 0x278   : > { %v920_v45 = vpop.permute.xlu1 %919 }
 0x279   : > { %v931_v59 = vadd.f32 %v920_v45, %v817_v57 }
 0x27c   : > { %v922_v13 = vpop.permute.xlu0 %921  ;;  %v812_v15 = vpop.permute.xlu1 %811 }
 0x27d   : > { %v820_v34 = vadd.f32 %v812_v15, %v706_v24 }
 0x280   : > { %v1038_v47 = vpop.permute.xlu0 %1037  ;;  %v926_v46 = vpop.permute.xlu1 %925 }
 0x281   : > { %v934_v32 = vadd.f32 %v926_v46, %v820_v34  ;;  %v1047_v1 = vadd.f32 %v1038_v47, %v933_v61 }
 0x284   : > { %v1154_v16 = vpop.permute.xlu0 %1153  ;;  %v808_v17 = vpop.permute.xlu1 %807 }
 0x285   : > { %v818_v22 = vadd.f32 %v808_v17, %v704_v20 }
 0x287   : > { %v932_v53 = vadd.f32 %v922_v13, %v818_v22 }
 0x288   : > { %v1036_v19 = vpop.permute.xlu0 %1035  ;;  %v1152_v49 = vpop.permute.xlu1 %1151 }
 0x289   : > { %v1046_v26 = vadd.f32 %v1036_v19, %v932_v53  ;;  %v1161_v35 = vadd.f32 %v1152_v49, %v1047_v1 }
 0x28c   : > { %v1150_v51 = vpop.permute.xlu0 %1149  ;;  %v1034_v54 = vpop.permute.xlu1 %1033 }
 0x28d   : > { %v1160_v58 = vadd.f32 %v1150_v51, %v1046_v26  ;;  %v1045_v29 = vadd.f32 %v1034_v54, %v931_v59 }
 0x290   : > { %v1268_v60 = vpop.permute.xlu0 %1267  ;;  %v1148_v38 = vpop.permute.xlu1 %1147 }
 0x291   : > { %v1159_v43 = vadd.f32 %v1148_v38, %v1045_v29 }
 0x294   : > { %v1264_v37 = vpop.permute.xlu0 %1263  ;;  %v1040_v62 = vpop.permute.xlu1 %1039 }
 0x295   : > { %v1048_v27 = vadd.f32 %v1040_v62, %v934_v32  ;;  %v1274_v2 = vadd.f32 %v1264_v37, %v1160_v58 }
 0x297   : > { %v1162_v39 = vadd.f32 %v1154_v16, %v1048_v27  ;;  %v1302_v30 = vmul.f32 %v2129_v6, %v1274_v2 }
 0x298   : > { %v1266_v28 = vpop.permute.xlu1 %1265 }
 0x299   : > { %v1276_v40 = vadd.f32 %v1268_v60, %v1162_v39  ;;  %v1275_v63 = vadd.f32 %v1266_v28, %v1161_v35  ;;  %v1330_v42 = vadd.f32 %v2133_v8, %v1302_v30 }
 0x29b   : > { %v1304_v10 = vmul.f32 %v2127_v5, %v1276_v40  ;;  %v1303_v41 = vmul.f32 %v2123_v3, %v1275_v63  ;;  %v1334_v46 = vmax.f32 %v1330_v42, 0.0 }
 0x29c   : > { %v1262_v44 = vpop.permute.xlu1 %1261 }
 0x29d   : > { %v1332_v11 = vadd.f32 %v2125_v4, %v1304_v10  ;;  %v1331_v12 = vadd.f32 %v2131_v7, %v1303_v41  ;;  %v1273_v0 = vadd.f32 %v1262_v44, %v1159_v43  ;;  %v1337_v4 = vld [vmem:[%s2335_s4] sm:$0x3] }
 0x29f   : > { %v1336_v45 = vmax.f32 %v1332_v11, 0.0  ;;  %v1335_v13 = vmax.f32 %v1331_v12, 0.0  ;;  %v1301_v15 = vmul.f32 %v2135_v9, %v1273_v0 }
 0x2a1   : > { %v1339_v47 = vpack.c.bf16 %v1336_v45, %v1335_v13  ;;  %v1329_v6 = vadd.f32 %v2142_v14, %v1301_v15 }
 0x2a3   : > { %v1333_v5 = vmax.f32 %v1329_v6, 0.0  ;;  %1677 = vmatpush3.bf16.msra.mxu1 %v1339_v47 }
 0x2a4   : > { %1678 = vmatprep.subr.bf16.mxu1 %v1792_v36 }
 0x2a5   : > { %v1338_v3 = vpack.c.bf16 %v1334_v46, %v1333_v5 }
 0x2a7   : > { %1679 = vmatpush3.bf16.msra.mxu1 %v1338_v3 }
 0x2a9   : > { %v1344_v7 = vpop.permute.xlu1 %1343 }
 0x2aa   : > { %1681 = vmatmul.mubr.msk.bf16.vlgmr.msra.gmra.mxu1 %vm1346_vm3, %v1337_v4 }
 0x36a   : > { %v1384_v8 = vpop.f32.mrf.mxu1 }
 0x36b   : > { %v1385_v9 = vadd.f32 %v1384_v8, %v1344_v7 }
 0x36c   : > { %v1682_v14 = vpop.f32.mrf.mxu1 }
 0x36d   : > { %1391 = vst.msk [vmem:[%s264_s23] sm:$0x7] %vm1390_vm4, %v1385_v9 }
 0x36e   : > { %v1387_v36 = vpop.f32.mrf.mxu1 }
 0x370   : > { %v1683_v16 = vpop.f32.mrf.mxu1 }
 0x371 PF: > { %s17_s21 = sadd.s32 1, %s1777_s21  }
 0x372   : > { %p14_p1 = scmp.ge.s32.totalorder %s17_s21, 4  }
 0x374   :  { %16 = sbr.rel (!%p14_p1) target bundleno = 1 (0x1), region = 87 }
 0x379   :  { %1411 = vsyncpa [#allocation3], 1 }
 0x37a   :  { %1413 = vsyncpa [#allocation3 + $0x1], 1 }

</bundles_post_ra>
